<compile_context>
chip_gen: v7x
topology: tpu7x:2x2x1
jax: 0.10.0
libtpu: 0.0.40
codegen_flags: <defaults>
</compile_context>

<pallas_src>
import jax
import jax.numpy as jnp
from jax.experimental import pallas as pl
from jax.experimental.pallas import tpu as pltpu


def _round_up(x, m):
    return (x + m - 1) // m * m


def _dueling_qrdqn_kernel(x_ref, wb_ref, bb_ref, w1_ref, b1_ref, w2_ref, b2_ref, out_ref):
    f32 = jnp.float32

    # SimpleBody: relu(Linear(input_dim_pad, 128))
    h = jnp.dot(x_ref[...], wb_ref[...], preferred_element_type=f32) + bb_ref[...]
    h = jnp.maximum(h, 0.0)

    # Merged hidden layer: relu(h @ [Wa1 | Wv1] + [ba1 | bv1])  -> (TB, 1024) == [a1 | v1]
    hv = jnp.dot(h.astype(w1_ref.dtype), w1_ref[...], preferred_element_type=f32) + b1_ref[...]
    hv = jnp.maximum(hv, 0.0)

    # Merged, dueling-folded head: [a1 | v1] @ [Wa2_centered ; Wv2_tiled] + (ba2_c + bv2_tiled).
    # The result IS the final output slab; one lane-dense full-tile store.
    out = jnp.dot(hv.astype(w2_ref.dtype), w2_ref[...], preferred_element_type=f32) + b2_ref[...]
    out_ref[...] = out.astype(out_ref.dtype)


def dueling_qrdqn_forward(x, packed_params, *, num_actions, quantiles, tile_b=512):
    """x: (B, input_dim) float32. packed_params: output of pack_params.
    Returns (B, num_actions, quantiles) float32."""
    wb, bb, w1, b1, w2, b2 = packed_params
    B, d_in = x.shape
    d_pad = wb.shape[0]
    out_pad = w2.shape[1]
    out_cols = num_actions * quantiles
    assert out_pad >= out_cols

    # Pad the feature dim (zero columns) to match the packed body weight; cast to weight dtype.
    if d_in < d_pad:
        x = jnp.pad(x, ((0, 0), (0, d_pad - d_in)))
    x = x.astype(wb.dtype)

    # Batch tiling: largest tile <= tile_b, batch zero-padded to a multiple of it.
    # (For v7x's two TensorCores, large batches naturally get >= 2 parallel grid steps.)
    b8 = _round_up(max(B, 1), 8)
    tb = min(tile_b, b8)
    b_pad = _round_up(b8, tb)
    if b_pad != B:
        x = jnp.pad(x, ((0, b_pad - B), (0, 0)))

    grid = (b_pad // tb,)

    def resident(arr):
        # Same block every grid step -> weight/bias stays VMEM-resident.
        # (On v7x one could add pipeline_mode=pl.Buffered(1) to skip the second buffer.)
        return pl.BlockSpec(arr.shape, lambda i: (0, 0))

    in_specs = [pl.BlockSpec((tb, d_pad), lambda i: (i, 0))]
    in_specs += [resident(a) for a in packed_params]
    out_specs = pl.BlockSpec((tb, out_pad), lambda i: (i, 0))

    out2d = pl.pallas_call(
        _dueling_qrdqn_kernel,
        out_shape=jax.ShapeDtypeStruct((b_pad, out_pad), jnp.float32),
        grid=grid,
        in_specs=in_specs,
        out_specs=out_specs,
        compiler_params=pltpu.CompilerParams(
            dimension_semantics=("parallel",)),
    )(x, *packed_params)

    # Contiguous trailing-column drop + batch-row drop (cheap; keep fused under the caller's jit).
    return out2d[:B, :out_cols].reshape(B, num_actions, quantiles)


def init_params(key, input_dim, num_actions, quantiles, hidden_body=128, hidden=512):
    """Unpadded parameters in (in, out) layout, mimicking nn.Linear default init."""
    ks = jax.random.split(key, 10)

    def lin(kw, kb, fan_in, fan_out):
        s = 1.0 / jnp.sqrt(fan_in)
        w = jax.random.uniform(kw, (fan_in, fan_out), jnp.float32, -s, s)
        b = jax.random.uniform(kb, (1, fan_out), jnp.float32, -s, s)
        return w, b

    wb, bb = lin(ks[0], ks[1], input_dim, hidden_body)
    wa1, ba1 = lin(ks[2], ks[3], hidden_body, hidden)
    wa2, ba2 = lin(ks[4], ks[5], hidden, num_actions * quantiles)
    wv1, bv1 = lin(ks[6], ks[7], hidden_body, hidden)
    wv2, bv2 = lin(ks[8], ks[9], hidden, quantiles)
    return (wb, bb, wa1, ba1, wa2, ba2, wv1, bv1, wv2, bv2)


def pack_params(params, *, num_actions, quantiles, param_dtype=jnp.float32):
    """Fuse + pad parameters once, at pack time (all in f32 before any cast):
       - Wb rows zero-padded so input_dim is a multiple of 8.
       - Hidden layers merged: W1 = [Wa1 | Wv1] (128, 1024), b1 = [ba1 | bv1].
       - Dueling combine folded into the head: W2 = [Wa2 - mean_a Wa2 ; Wv2 tiled per action]
         (1024, A*quantiles), b2 = (ba2 - mean_a ba2) + bv2 tiled; columns zero-padded so the
         total output width is a multiple of 128 (padded columns are exactly zero in the output).
       Weights may be cast to bf16 via param_dtype; biases stay f32."""
    wb, bb, wa1, ba1, wa2, ba2, wv1, bv1, wv2, bv2 = params
    d_in = wb.shape[0]
    d_pad = _round_up(d_in, 8)
    hidden = wa1.shape[1]
    out_cols = num_actions * quantiles
    out_pad = _round_up(out_cols, 128)

    # Body weight: zero rows for the padded input features.
    wb_p = jnp.pad(wb, ((0, d_pad - d_in), (0, 0)))

    # Merged hidden layer (relu commutes with the lane-dim concat).
    w1 = jnp.concatenate([wa1, wv1], axis=1)            # (128, 1024)
    b1 = jnp.concatenate([ba1, bv1], axis=1)            # (1, 1024)

    # Centered advantage head (dueling combine folded into the weights).
    wa2_r = wa2.reshape(hidden, num_actions, quantiles)
    ba2_r = ba2.reshape(1, num_actions, quantiles)
    wa2_c = wa2_r - wa2_r.mean(axis=1, keepdims=True)
    ba2_c = ba2_r - ba2_r.mean(axis=1, keepdims=True)

    # Value head tiled per action, stacked on the contraction dim.
    wv2_t = jnp.broadcast_to(wv2[:, None, :], (hidden, num_actions, quantiles))
    bv2_t = jnp.broadcast_to(bv2[:, None, :], (1, num_actions, quantiles))

    w2 = jnp.concatenate([wa2_c, wv2_t], axis=0).reshape(2 * hidden, out_cols)
    b2 = (ba2_c + bv2_t).reshape(1, out_cols)

    # Tight quantile packing: pad only the total output width to a multiple of 128.
    w2 = jnp.pad(w2, ((0, 0), (0, out_pad - out_cols)))
    b2 = jnp.pad(b2, ((0, 0), (0, out_pad - out_cols)))

    cast = lambda w: w.astype(param_dtype)
    return (cast(wb_p), bb.astype(jnp.float32),
            cast(w1), b1.astype(jnp.float32),
            cast(w2), b2.astype(jnp.float32))


def reference_forward(x, params, *, num_actions, quantiles):
    wb, bb, wa1, ba1, wa2, ba2, wv1, bv1, wv2, bv2 = params
    h = jnp.maximum(x @ wb + bb, 0.0)
    adv = (jnp.maximum(h @ wa1 + ba1, 0.0) @ wa2 + ba2).reshape(-1, num_actions, quantiles)
    val = (jnp.maximum(h @ wv1 + bv1, 0.0) @ wv2 + bv2).reshape(-1, 1, quantiles)
    return val + adv - adv.mean(axis=1, keepdims=True)


if __name__ == "__main__":
    # Small, MLP-consistent shapes: batch=8, input_dim=4 (e.g. CartPole obs),
    # num_actions=2, quantiles=51 (QR-DQN default).
    B, INPUT_DIM, NUM_ACTIONS, QUANTILES = 8, 4, 2, 51

    key = jax.random.PRNGKey(0)
    kx, kp = jax.random.split(key)
    x = jax.random.normal(kx, (B, INPUT_DIM), jnp.float32)

    params = init_params(kp, INPUT_DIM, NUM_ACTIONS, QUANTILES)
    packed = pack_params(params, num_actions=NUM_ACTIONS, quantiles=QUANTILES)

    out = dueling_qrdqn_forward(x, packed, num_actions=NUM_ACTIONS, quantiles=QUANTILES)
    out = jax.block_until_ready(out)

    ref = reference_forward(x, params, num_actions=NUM_ACTIONS, quantiles=QUANTILES)
    assert out.shape == (B, NUM_ACTIONS, QUANTILES)
    assert jnp.allclose(out, ref, atol=1e-4, rtol=1e-4), \
        float(jnp.max(jnp.abs(out - ref)))

    print("KERNEL_OK")
</pallas_src>

<mosaic_0001>
module attributes {stable_mosaic.version = 11 : i64} {
  func.func @_dueling_qrdqn_kernel(%arg0: i32, %arg1: memref<8x8xf32, #tpu.memory_space<vmem>>, %arg2: memref<8x128xf32, #tpu.memory_space<vmem>>, %arg3: memref<1x128xf32, #tpu.memory_space<vmem>>, %arg4: memref<128x1024xf32, #tpu.memory_space<vmem>>, %arg5: memref<1x1024xf32, #tpu.memory_space<vmem>>, %arg6: memref<1024x128xf32, #tpu.memory_space<vmem>>, %arg7: memref<1x128xf32, #tpu.memory_space<vmem>>, %arg8: memref<8x128xf32, #tpu.memory_space<vmem>>) attributes {dimension_semantics = [#tpu.dimension_semantics<parallel>], iteration_bounds = array<i64: 1>, scalar_prefetch = 0 : i64, scratch_operands = 0 : i64, tpu.core_type = #tpu.core_type<tc>, window_params = [{transform_indices = @transform_0, window_bounds = array<i64: 8, 8>}, {pipeline_mode = #tpu.pipeline_mode<synchronous>, transform_indices = @transform_1, window_bounds = array<i64: 8, 128>}, {pipeline_mode = #tpu.pipeline_mode<synchronous>, transform_indices = @transform_2, window_bounds = array<i64: 1, 128>}, {pipeline_mode = #tpu.pipeline_mode<synchronous>, transform_indices = @transform_3, window_bounds = array<i64: 128, 1024>}, {pipeline_mode = #tpu.pipeline_mode<synchronous>, transform_indices = @transform_4, window_bounds = array<i64: 1, 1024>}, {pipeline_mode = #tpu.pipeline_mode<synchronous>, transform_indices = @transform_5, window_bounds = array<i64: 1024, 128>}, {pipeline_mode = #tpu.pipeline_mode<synchronous>, transform_indices = @transform_6, window_bounds = array<i64: 1, 128>}, {transform_indices = @transform_7, window_bounds = array<i64: 8, 128>}]} {
    %c0 = arith.constant 0 : index
    %c0_0 = arith.constant 0 : index
    %0 = vector.load %arg1[%c0, %c0_0] : memref<8x8xf32, #tpu.memory_space<vmem>>, vector<8x8xf32>
    %c0_1 = arith.constant 0 : index
    %c0_2 = arith.constant 0 : index
    %1 = vector.load %arg2[%c0_1, %c0_2] : memref<8x128xf32, #tpu.memory_space<vmem>>, vector<8x128xf32>
    %cst = arith.constant dense<0.000000e+00> : vector<8x128xf32>
    %2 = tpu.matmul %0, %1, %cst {dimension_numbers = #tpu.dot_dimension_numbers<[1], [0], [0], [1], [0, 0, 1, 1], [], []>} : vector<8x8xf32>, vector<8x128xf32>, vector<8x128xf32> -> vector<8x128xf32>
    %c0_3 = arith.constant 0 : index
    %c0_4 = arith.constant 0 : index
    %3 = vector.load %arg3[%c0_3, %c0_4] : memref<1x128xf32, #tpu.memory_space<vmem>>, vector<1x128xf32>
    %4 = vector.broadcast %3 : vector<1x128xf32> to vector<8x128xf32>
    %5 = arith.addf %2, %4 : vector<8x128xf32>
    %cst_5 = arith.constant 0.000000e+00 : f32
    %6 = vector.broadcast %cst_5 : f32 to vector<8x128xf32>
    %7 = arith.maximumf %5, %6 : vector<8x128xf32>
    %c0_6 = arith.constant 0 : index
    %c0_7 = arith.constant 0 : index
    %8 = vector.load %arg4[%c0_6, %c0_7] : memref<128x1024xf32, #tpu.memory_space<vmem>>, vector<128x1024xf32>
    %cst_8 = arith.constant dense<0.000000e+00> : vector<8x1024xf32>
    %9 = tpu.matmul %7, %8, %cst_8 {dimension_numbers = #tpu.dot_dimension_numbers<[1], [0], [0], [1], [0, 0, 1, 1], [], []>} : vector<8x128xf32>, vector<128x1024xf32>, vector<8x1024xf32> -> vector<8x1024xf32>
    %c0_9 = arith.constant 0 : index
    %c0_10 = arith.constant 0 : index
    %10 = vector.load %arg5[%c0_9, %c0_10] : memref<1x1024xf32, #tpu.memory_space<vmem>>, vector<1x1024xf32>
    %11 = vector.broadcast %10 : vector<1x1024xf32> to vector<8x1024xf32>
    %12 = arith.addf %9, %11 : vector<8x1024xf32>
    %cst_11 = arith.constant 0.000000e+00 : f32
    %13 = vector.broadcast %cst_11 : f32 to vector<8x1024xf32>
    %14 = arith.maximumf %12, %13 : vector<8x1024xf32>
    %c0_12 = arith.constant 0 : index
    %c0_13 = arith.constant 0 : index
    %15 = vector.load %arg6[%c0_12, %c0_13] : memref<1024x128xf32, #tpu.memory_space<vmem>>, vector<1024x128xf32>
    %cst_14 = arith.constant dense<0.000000e+00> : vector<8x128xf32>
    %16 = tpu.matmul %14, %15, %cst_14 {dimension_numbers = #tpu.dot_dimension_numbers<[1], [0], [0], [1], [0, 0, 1, 1], [], []>} : vector<8x1024xf32>, vector<1024x128xf32>, vector<8x128xf32> -> vector<8x128xf32>
    %c0_15 = arith.constant 0 : index
    %c0_16 = arith.constant 0 : index
    %17 = vector.load %arg7[%c0_15, %c0_16] : memref<1x128xf32, #tpu.memory_space<vmem>>, vector<1x128xf32>
    %18 = vector.broadcast %17 : vector<1x128xf32> to vector<8x128xf32>
    %19 = arith.addf %16, %18 : vector<8x128xf32>
    %c0_17 = arith.constant 0 : index
    %c0_18 = arith.constant 0 : index
    %20 = vector.load %arg8[%c0_17, %c0_18] : memref<8x128xf32, #tpu.memory_space<vmem>>, vector<8x128xf32>
    tpu.vector_store %arg8[%c0_17, %c0_18], %19 {strides = array<i32>} : memref<8x128xf32, #tpu.memory_space<vmem>>, vector<8x128xf32>,
    return
  }
  func.func @transform_0(%arg0: i32) -> (i32, i32) {
    %c0_i32 = arith.constant 0 : i32
    %c0_i32_0 = arith.constant 0 : i32
    return %arg0, %c0_i32 : i32, i32
  }
  func.func @transform_1(%arg0: i32) -> (i32, i32) {
    %c0_i32 = arith.constant 0 : i32
    %c0_i32_0 = arith.constant 0 : i32
    %c0_i32_1 = arith.constant 0 : i32
    return %c0_i32, %c0_i32_0 : i32, i32
  }
  func.func @transform_2(%arg0: i32) -> (i32, i32) {
    %c0_i32 = arith.constant 0 : i32
    %c0_i32_0 = arith.constant 0 : i32
    %c0_i32_1 = arith.constant 0 : i32
    return %c0_i32, %c0_i32_0 : i32, i32
  }
  func.func @transform_3(%arg0: i32) -> (i32, i32) {
    %c0_i32 = arith.constant 0 : i32
    %c0_i32_0 = arith.constant 0 : i32
    %c0_i32_1 = arith.constant 0 : i32
    return %c0_i32, %c0_i32_0 : i32, i32
  }
  func.func @transform_4(%arg0: i32) -> (i32, i32) {
    %c0_i32 = arith.constant 0 : i32
    %c0_i32_0 = arith.constant 0 : i32
    %c0_i32_1 = arith.constant 0 : i32
    return %c0_i32, %c0_i32_0 : i32, i32
  }
  func.func @transform_5(%arg0: i32) -> (i32, i32) {
    %c0_i32 = arith.constant 0 : i32
    %c0_i32_0 = arith.constant 0 : i32
    %c0_i32_1 = arith.constant 0 : i32
    return %c0_i32, %c0_i32_0 : i32, i32
  }
  func.func @transform_6(%arg0: i32) -> (i32, i32) {
    %c0_i32 = arith.constant 0 : i32
    %c0_i32_0 = arith.constant 0 : i32
    %c0_i32_1 = arith.constant 0 : i32
    return %c0_i32, %c0_i32_0 : i32, i32
  }
  func.func @transform_7(%arg0: i32) -> (i32, i32) {
    %c0_i32 = arith.constant 0 : i32
    %c0_i32_0 = arith.constant 0 : i32
    return %arg0, %c0_i32 : i32, i32
  }
}

</mosaic_0001>

<bundles_post_ra>
// kernel: tpu_custom_call.1
= control target key start
LH: loop header
LB: loop body
LE: loop exit
PB: predicated region body
PF: predicated region fallthrough
CT: control target
= control target key end

     0   :  { %12 = vsyncpa [#allocation3], 0  ;;  %s1744_s0 = inlined_call_operand.hbm [shape: f32[8,8], index: 0, kind: input, shape index: {}]   ;;  %s1745_s1 = inlined_call_operand.hbm [shape: f32[8,128], index: 1, kind: input, shape index: {}]   ;;  %s1746_s2 = inlined_call_operand.vmem [shape: f32[1,128], index: 2, kind: input, shape index: {}]   ;;  %s1747_s3 = inlined_call_operand.hbm [shape: f32[128,1024], index: 3, kind: input, shape index: {}]   ;;  %s1748_s4 = inlined_call_operand.vmem [shape: f32[1,1024], index: 4, kind: input, shape index: {}]   ;;  %s1749_s5 = inlined_call_operand.hbm [shape: f32[1024,128], index: 5, kind: input, shape index: {}]   ;;  %s1750_s6 = inlined_call_operand.vmem [shape: f32[1,128], index: 6, kind: input, shape index: {}]   ;;  %s1751_s7 = inlined_call_operand.hbm [shape: f32[8,128], index: 7, kind: output, shape index: {}]  }
   0x1   :  { %13 = vsyncpa [#allocation6], 0 }
   0x2   :  { %14 = vsyncpa [#allocation9], 0 }
   0x3   :  { %15 = vsyncpa [#allocation4], 0  ;;  %s1592_s24 = smov [#allocation5]   ;;  %s1593_s26 = smov [#allocation2]  }
   0x4   :  { %s32_s25 = sshll.u32 %s1592_s24, 4  ;;  %s22_s27 = sshll.u32 %s1593_s26, 4  ;;  %s33_s25 = int_to_ptr.vmem [resolvable:$true] %s32_s25  ;;  %s23_s27 = int_to_ptr.vmem [resolvable:$true] %s22_s27 }
   0x5   :  { %s1474_s30 = scalar_lea.hbm %s1745_s1, 128 }
   0x6   :  { %p1475_p0 = scmp.ne.s32.totalorder %s1745_s1, %s1474_s30  ;;  %p1478_p1 = scmp.lt.u32.totalorder %s1474_s30, %s1745_s1 }
   0x8   :  { %p1480_p2 = pnand %p1478_p1, %p1475_p0 }
   0xa   :  { %1483 = shalt.err (!%p1480_p2)
}
   0xb   :  { %s1484_s12 = scalar_lea.vmem %s33_s25, 128  ;;  %p1489_p4 = scmp.lt.s32.totalorder %s33_s25, %s33_s25 }
   0xc   :  { %p1485_p3 = scmp.ne.s32.totalorder %s33_s25, %s1484_s12  ;;  %p1490_p5 = scmp.lt.s32.totalorder %s1484_s12, %s1484_s12 }
   0xe   :  { %p1491_p6 = por %p1490_p5, %p1489_p4 }
  0x10   :  { %p1492_p7 = pnand %p1491_p6, %p1485_p3 }
  0x12   :  { %1495 = shalt.err (!%p1492_p7)
}
  0x13   :  { %35 = dma.hbm_to_vmem [thread:$0]  %s1745_s1, 128, %s33_s25, [#allocation6]  }
  0x14   :  { %s1496_s17 = scalar_lea.hbm %s1744_s0, 128 }
  0x15   :  { %p1497_p8 = scmp.ne.s32.totalorder %s1744_s0, %s1496_s17  ;;  %p1500_p9 = scmp.lt.u32.totalorder %s1496_s17, %s1744_s0 }
  0x17   :  { %p1502_p10 = pnand %p1500_p9, %p1497_p8 }
  0x19   :  { %1505 = shalt.err (!%p1502_p10)
}
  0x1a   :  { %s1506_s22 = scalar_lea.vmem %s23_s27, 128  ;;  %p1511_p12 = scmp.lt.s32.totalorder %s23_s27, %s23_s27 }
  0x1b   :  { %p1507_p11 = scmp.ne.s32.totalorder %s23_s27, %s1506_s22  ;;  %p1512_p13 = scmp.lt.s32.totalorder %s1506_s22, %s1506_s22 }
  0x1d   :  { %p1513_p0 = por %p1512_p13, %p1511_p12 }
  0x1f   :  { %p1514_p1 = pnand %p1513_p0, %p1507_p11 }
  0x21   :  { %1517 = shalt.err (!%p1514_p1)
}
  0x22   :  { %25 = dma.hbm_to_vmem [thread:$0]  %s1744_s0, 128, %s23_s27, [#allocation3]  }
  0x23   :  { %s1594_s24 = smov [#allocation7]   ;;  %s1518_s29 = scalar_lea.hbm %s1747_s3, 16384 }
  0x24   :  { %s43_s25 = sshll.u32 %s1594_s24, 4  ;;  %p1519_p2 = scmp.ne.s32.totalorder %s1747_s3, %s1518_s29  ;;  %s44_s25 = int_to_ptr.vmem [resolvable:$true] %s43_s25 }
  0x25   :  { %p1522_p3 = scmp.lt.u32.totalorder %s1518_s29, %s1747_s3 }
  0x27   :  { %p1524_p4 = pnand %p1522_p3, %p1519_p2 }
  0x29   :  { %1527 = shalt.err (!%p1524_p4)
}
  0x2a   :  { %s1528_s11 = scalar_lea.vmem %s44_s25, 16384  ;;  %p1533_p6 = scmp.lt.s32.totalorder %s44_s25, %s44_s25 }
  0x2b   :  { %p1529_p5 = scmp.ne.s32.totalorder %s44_s25, %s1528_s11  ;;  %p1534_p7 = scmp.lt.s32.totalorder %s1528_s11, %s1528_s11 }
  0x2d   :  { %p1535_p8 = por %p1534_p7, %p1533_p6 }
  0x2f   :  { %p1536_p9 = pnand %p1535_p8, %p1529_p5 }
  0x31   :  { %1539 = shalt.err (!%p1536_p9)
}
  0x32   :  { %s1595_s0 = smov 1024   ;;  %s1596_s27 = smov 64  }
  0x33   :  { %49 = dma.hbm_to_vmem [thread:$0]  %s1747_s3, 16384, %s44_s25, [#allocation6], %s1595_s0, %s1595_s0, %s1596_s27  }
  0x34   :  { %s1597_s14 = smov [#allocation8]   ;;  %s1540_s18 = scalar_lea.hbm %s1749_s5, 16384 }
  0x35   :  { %s57_s15 = sshll.u32 %s1597_s14, 4  ;;  %p1541_p10 = scmp.ne.s32.totalorder %s1749_s5, %s1540_s18  ;;  %s58_s15 = int_to_ptr.vmem [resolvable:$true] %s57_s15 }
  0x36   :  { %p1544_p11 = scmp.lt.u32.totalorder %s1540_s18, %s1749_s5 }
  0x38   :  { %p1546_p12 = pnand %p1544_p11, %p1541_p10 }
  0x3a   :  { %1549 = shalt.err (!%p1546_p12)
}
  0x3b   :  { %s1550_s1 = scalar_lea.vmem %s58_s15, 16384  ;;  %p1555_p0 = scmp.lt.s32.totalorder %s58_s15, %s58_s15 }
  0x3c   :  { %p1551_p13 = scmp.ne.s32.totalorder %s58_s15, %s1550_s1  ;;  %p1556_p1 = scmp.lt.s32.totalorder %s1550_s1, %s1550_s1 }
  0x3e   :  { %p1557_p2 = por %p1556_p1, %p1555_p0 }
  0x40   :  { %p1558_p3 = pnand %p1557_p2, %p1551_p13 }
  0x42   :  { %1561 = shalt.err (!%p1558_p3)
}
  0x43   :  { %s1598_s3 = smov 128   ;;  %s1599_s23 = smov 8  }
  0x44   :  { %63 = dma.hbm_to_vmem [thread:$0]  %s1749_s5, 16384, %s58_s15, [#allocation9], %s1598_s3, %s1598_s3, %s1599_s23  }
  0x45   :  { %1584 = dma.done.wait [#allocation3], 128  }
  0x46   :  { %1585 = vsyncadd [#allocation3], 4294967168 }
  0x47   :  { %1586 = dma.done.wait [#allocation6], 16512  }
  0x48   :  { %1587 = vsyncadd [#allocation6], 4294950784 }
  0x49   :  { %1588 = dma.done.wait [#allocation9], 16384  }
  0x4a   :  { %1589 = vsyncadd [#allocation9], 4294950912  ;;  %v1600_v0 = vmov 0.0   ;;  %vm1601_vm0 = vmmov 0   ;;  %vm87_vm1 = vcmask 64512   ;;  %v79_v1 = vld [vmem:[#allocation5] sm:$0xff] }
  0x4b   :  { %1202 = vmatprep.subr.mxu0 %v1600_v0  ;;  %1204 = vmatprep.mubr.msk.f32.mxu0 %vm1601_vm0, %v1600_v0  ;;  %v78_v2 = vld [vmem:[#allocation2] sm:$0xff]  ;;  %v163_v3 = vld [vmem:[#allocation7 + $0x8] sm:$0xff]  ;;  %v165_v5 = vld [vmem:[#allocation7 + $0x18] sm:$0xff]  ;;  %s1602_s30 = smov [#allocation10]  }
  0x4c   :  { %396 = vmatprep.mubr.f32.mxu1 %v1600_v0  ;;  %1203 = vmatpush3.msra.mxu0 %v79_v1  ;;  %v171_v4 = vld [vmem:[#allocation7 + $0x48] sm:$0xff]  ;;  %v173_v6 = vld [vmem:[#allocation7 + $0x58] sm:$0xff]  ;;  %v162_v9 = vld [vmem:[#allocation7] sm:$0xff]  ;;  %s1046_s8 = sshll.u32 %s1602_s30, 4  ;;  %s1047_s8 = int_to_ptr.vmem [resolvable:$true] %s1046_s8 }
  0x4d   :  { %1205 = vmatmul.mubr.msk.f32.vlgmr.msra.gmra.mrb[0].mxu0 %vm87_vm1, %v78_v2  ;;  %v1207_v7 = vpack.c.bf16 %v171_v4, %v163_v3  ;;  %v1239_v8 = vpack.c.bf16 %v173_v6, %v165_v5  ;;  %v170_v10 = vld [vmem:[#allocation7 + $0x40] sm:$0xff]  ;;  %v164_v11 = vld [vmem:[#allocation7 + $0x10] sm:$0xff]  ;;  %v179_v14 = vld [vmem:[#allocation7 + $0x88] sm:$0xff]  ;;  %s1562_s9 = scalar_lea.vmem %s1047_s8, 128  ;;  %p1567_p5 = scmp.lt.s32.totalorder %s1047_s8, %s1047_s8 }
  0x4e   :  { %v1209_v12 = vpack.c.bf16 %v170_v10, %v162_v9  ;;  %v172_v13 = vld [vmem:[#allocation7 + $0x50] sm:$0xff]  ;;  %v187_v15 = vld [vmem:[#allocation7 + $0xc8] sm:$0xff]  ;;  %467 = vmatprep.mubr.f32.mxu0 %v1600_v0  ;;  %v181_v18 = vld [vmem:[#allocation7 + $0x98] sm:$0xff]  ;;  %p1563_p4 = scmp.ne.s32.totalorder %s1047_s8, %s1562_s9  ;;  %p1568_p6 = scmp.lt.s32.totalorder %s1562_s9, %s1562_s9 }
  0x4f   :  { %1208 = vmatprep.subr.bf16.mxu1 %v1207_v7  ;;  %1240 = vmatprep.subr.bf16.mxu0 %v1239_v8  ;;  %v1241_v16 = vpack.c.bf16 %v172_v13, %v164_v11  ;;  %v1211_v17 = vpack.c.bf16 %v187_v15, %v179_v14  ;;  %v189_v19 = vld [vmem:[#allocation7 + $0xd8] sm:$0xff]  ;;  %v178_v20 = vld [vmem:[#allocation7 + $0x80] sm:$0xff]  ;;  %v180_v23 = vld [vmem:[#allocation7 + $0x90] sm:$0xff] }
  0x50   :  { %1210 = vmatpush1.bf16.msra.mxu1 %v1209_v12  ;;  %v1243_v21 = vpack.c.bf16 %v189_v19, %v181_v18  ;;  %v186_v22 = vld [vmem:[#allocation7 + $0xc0] sm:$0xff]  ;;  %v188_v24 = vld [vmem:[#allocation7 + $0xd0] sm:$0xff]  ;;  %v195_v27 = vld [vmem:[#allocation7 + $0x108] sm:$0xff]  ;;  %p1569_p7 = por %p1568_p6, %p1567_p5 }
  0x51   :  { %1242 = vmatpush1.bf16.msra.mxu0 %v1241_v16  ;;  %1212 = vmatprep.subr.bf16.mxu1 %v1211_v17  ;;  %v1213_v25 = vpack.c.bf16 %v186_v22, %v178_v20  ;;  %v1245_v26 = vpack.c.bf16 %v188_v24, %v180_v23  ;;  %v203_v28 = vld [vmem:[#allocation7 + $0x148] sm:$0xff]  ;;  %v197_v29 = vld [vmem:[#allocation7 + $0x118] sm:$0xff]  ;;  %v194_v32 = vld [vmem:[#allocation7 + $0x100] sm:$0xff] }
  0x52   :  { %1244 = vmatprep.subr.bf16.mxu0 %v1243_v21  ;;  %v1215_v30 = vpack.c.bf16 %v203_v28, %v195_v27  ;;  %v205_v31 = vld [vmem:[#allocation7 + $0x158] sm:$0xff]  ;;  %v202_v33 = vld [vmem:[#allocation7 + $0x140] sm:$0xff]  ;;  %v196_v35 = vld [vmem:[#allocation7 + $0x110] sm:$0xff]  ;;  %p1570_p8 = pnand %p1569_p7, %p1563_p4 }
  0x53   :  { %v1247_v34 = vpack.c.bf16 %v205_v31, %v197_v29  ;;  %v204_v36 = vld [vmem:[#allocation7 + $0x150] sm:$0xff]  ;;  %v211_v37 = vld [vmem:[#allocation7 + $0x188] sm:$0xff]  ;;  %v1217_v38 = vpack.c.bf16 %v202_v33, %v194_v32  ;;  %v213_v40 = vld [vmem:[#allocation7 + $0x198] sm:$0xff] }
  0x54   :  { %1214 = vmatpush1.bf16.msra.mxu1 %v1213_v25  ;;  %v219_v39 = vld [vmem:[#allocation7 + $0x1c8] sm:$0xff]  ;;  %v221_v41 = vld [vmem:[#allocation7 + $0x1d8] sm:$0xff]  ;;  %v1249_v42 = vpack.c.bf16 %v204_v36, %v196_v35  ;;  %v210_v44 = vld [vmem:[#allocation7 + $0x180] sm:$0xff] }
  0x55   :  { %1246 = vmatpush1.bf16.msra.mxu0 %v1245_v26  ;;  %1216 = vmatprep.subr.bf16.mxu1 %v1215_v30  ;;  %v1219_v43 = vpack.c.bf16 %v219_v39, %v211_v37  ;;  %v218_v45 = vld [vmem:[#allocation7 + $0x1c0] sm:$0xff]  ;;  %v212_v46 = vld [vmem:[#allocation7 + $0x190] sm:$0xff]  ;;  %v1251_v47 = vpack.c.bf16 %v221_v41, %v213_v40  ;;  %v227_v49 = vld [vmem:[#allocation7 + $0x208] sm:$0xff] }
  0x56   :  { %1248 = vmatprep.subr.bf16.mxu0 %v1247_v34  ;;  %v220_v48 = vld [vmem:[#allocation7 + $0x1d0] sm:$0xff]  ;;  %v235_v50 = vld [vmem:[#allocation7 + $0x248] sm:$0xff]  ;;  %v229_v51 = vld [vmem:[#allocation7 + $0x218] sm:$0xff]  ;;  %v1221_v53 = vpack.c.bf16 %v218_v45, %v210_v44 }
  0x57   :  { %v237_v52 = vld [vmem:[#allocation7 + $0x258] sm:$0xff]  ;;  %v1253_v54 = vpack.c.bf16 %v220_v48, %v212_v46  ;;  %v1223_v55 = vpack.c.bf16 %v235_v50, %v227_v49  ;;  %v226_v56 = vld [vmem:[#allocation7 + $0x200] sm:$0xff]  ;;  %v228_v58 = vld [vmem:[#allocation7 + $0x210] sm:$0xff] }
  0x58   :  { %1218 = vmatpush1.bf16.msra.mxu1 %v1217_v38  ;;  %v234_v57 = vld [vmem:[#allocation7 + $0x240] sm:$0xff]  ;;  %v1255_v59 = vpack.c.bf16 %v237_v52, %v229_v51  ;;  %v236_v60 = vld [vmem:[#allocation7 + $0x250] sm:$0xff]  ;;  %v243_v61 = vld [vmem:[#allocation7 + $0x288] sm:$0xff] }
  0x59   :  { %1250 = vmatpush1.bf16.msra.mxu0 %v1249_v42  ;;  %1220 = vmatprep.subr.bf16.mxu1 %v1219_v43  ;;  %v251_v62 = vld [vmem:[#allocation7 + $0x2c8] sm:$0xff]  ;;  %v245_v63 = vld [vmem:[#allocation7 + $0x298] sm:$0xff]  ;;  %v1225_v2 = vpack.c.bf16 %v234_v57, %v226_v56  ;;  %v1257_v3 = vpack.c.bf16 %v236_v60, %v228_v58  ;;  %v242_v5 = vld [vmem:[#allocation7 + $0x280] sm:$0xff] }
  0x5a   :  { %1252 = vmatprep.subr.bf16.mxu0 %v1251_v47  ;;  %v253_v1 = vld [vmem:[#allocation7 + $0x2d8] sm:$0xff]  ;;  %v1227_v4 = vpack.c.bf16 %v251_v62, %v243_v61  ;;  %v250_v6 = vld [vmem:[#allocation7 + $0x2c0] sm:$0xff]  ;;  %v244_v7 = vld [vmem:[#allocation7 + $0x290] sm:$0xff] }
  0x5b   :  { %v1259_v8 = vpack.c.bf16 %v253_v1, %v245_v63  ;;  %v252_v9 = vld [vmem:[#allocation7 + $0x2d0] sm:$0xff]  ;;  %v259_v10 = vld [vmem:[#allocation7 + $0x308] sm:$0xff]  ;;  %v261_v12 = vld [vmem:[#allocation7 + $0x318] sm:$0xff]  ;;  %v1229_v14 = vpack.c.bf16 %v250_v6, %v242_v5 }
  0x5c   :  { %1222 = vmatpush1.bf16.msra.mxu1 %v1221_v53  ;;  %v267_v11 = vld [vmem:[#allocation7 + $0x348] sm:$0xff]  ;;  %v269_v13 = vld [vmem:[#allocation7 + $0x358] sm:$0xff]  ;;  %v1261_v15 = vpack.c.bf16 %v252_v9, %v244_v7  ;;  %v258_v17 = vld [vmem:[#allocation7 + $0x300] sm:$0xff] }
  0x5d   :  { %1254 = vmatpush1.bf16.msra.mxu0 %v1253_v54  ;;  %1224 = vmatprep.subr.bf16.mxu1 %v1223_v55  ;;  %v1231_v16 = vpack.c.bf16 %v267_v11, %v259_v10  ;;  %v266_v18 = vld [vmem:[#allocation7 + $0x340] sm:$0xff]  ;;  %v1263_v19 = vpack.c.bf16 %v269_v13, %v261_v12  ;;  %v260_v20 = vld [vmem:[#allocation7 + $0x310] sm:$0xff]  ;;  %v275_v24 = vld [vmem:[#allocation7 + $0x388] sm:$0xff] }
  0x5e   :  { %1256 = vmatprep.subr.bf16.mxu0 %v1255_v59  ;;  %v268_v21 = vld [vmem:[#allocation7 + $0x350] sm:$0xff]  ;;  %v1233_v22 = vpack.c.bf16 %v266_v18, %v258_v17  ;;  %v283_v25 = vld [vmem:[#allocation7 + $0x3c8] sm:$0xff]  ;;  %v277_v26 = vld [vmem:[#allocation7 + $0x398] sm:$0xff] }
  0x5f   :  { %v1265_v23 = vpack.c.bf16 %v268_v21, %v260_v20  ;;  %v1235_v27 = vpack.c.bf16 %v283_v25, %v275_v24  ;;  %v285_v28 = vld [vmem:[#allocation7 + $0x3d8] sm:$0xff]  ;;  %v274_v29 = vld [vmem:[#allocation7 + $0x380] sm:$0xff]  ;;  %v276_v33 = vld [vmem:[#allocation7 + $0x390] sm:$0xff] }
  0x60   :  { %1226 = vmatpush1.bf16.msra.mxu1 %v1225_v2  ;;  %v282_v30 = vld [vmem:[#allocation7 + $0x3c0] sm:$0xff]  ;;  %v1267_v31 = vpack.c.bf16 %v285_v28, %v277_v26  ;;  %v284_v34 = vld [vmem:[#allocation7 + $0x3d0] sm:$0xff]  ;;  %v167_v36 = vld [vmem:[#allocation7 + $0x28] sm:$0xff] }
  0x61   :  { %1258 = vmatpush1.bf16.msra.mxu0 %v1257_v3  ;;  %1228 = vmatprep.subr.bf16.mxu1 %v1227_v4  ;;  %v1237_v32 = vpack.c.bf16 %v282_v30, %v274_v29  ;;  %v1269_v35 = vpack.c.bf16 %v284_v34, %v276_v33  ;;  %v175_v37 = vld [vmem:[#allocation7 + $0x68] sm:$0xff]  ;;  %v169_v38 = vld [vmem:[#allocation7 + $0x38] sm:$0xff]  ;;  %v1057_v42 = vld [vmem:[%s1746_s2] ss:$0 sm:$0xff] }
  0x62   :  { %1260 = vmatprep.subr.bf16.mxu0 %v1259_v8  ;;  %v1271_v39 = vpack.c.bf16 %v175_v37, %v167_v36  ;;  %v177_v40 = vld [vmem:[#allocation7 + $0x78] sm:$0xff]  ;;  %v166_v43 = vld [vmem:[#allocation7 + $0x20] sm:$0xff]  ;;  %v168_v45 = vld [vmem:[#allocation7 + $0x30] sm:$0xff] }
  0x63   :  { %v1303_v41 = vpack.c.bf16 %v177_v40, %v169_v38  ;;  %v174_v44 = vld [vmem:[#allocation7 + $0x60] sm:$0xff]  ;;  %v176_v46 = vld [vmem:[#allocation7 + $0x70] sm:$0xff]  ;;  %v183_v47 = vld [vmem:[#allocation7 + $0xa8] sm:$0xff] }
  0x64   :  { %1230 = vmatpush1.bf16.msra.mxu1 %v1229_v14  ;;  %v191_v49 = vld [vmem:[#allocation7 + $0xe8] sm:$0xff]  ;;  %v185_v50 = vld [vmem:[#allocation7 + $0xb8] sm:$0xff]  ;;  %v1273_v54 = vpack.c.bf16 %v174_v44, %v166_v43  ;;  %v1305_v55 = vpack.c.bf16 %v176_v46, %v168_v45  ;;  %v182_v56 = vld [vmem:[#allocation7 + $0xa0] sm:$0xff] }
  0x65   :  { %1262 = vmatpush1.bf16.msra.mxu0 %v1261_v15  ;;  %1232 = vmatprep.subr.bf16.mxu1 %v1231_v16  ;;  %v193_v51 = vld [vmem:[#allocation7 + $0xf8] sm:$0xff]  ;;  %v190_v57 = vld [vmem:[#allocation7 + $0xe0] sm:$0xff]  ;;  %v1275_v59 = vpack.c.bf16 %v191_v49, %v183_v47  ;;  %v184_v61 = vld [vmem:[#allocation7 + $0xb0] sm:$0xff] }
  0x66   :  { %1264 = vmatprep.subr.bf16.mxu0 %v1263_v19  ;;  %v1307_v60 = vpack.c.bf16 %v193_v51, %v185_v50  ;;  %v192_v62 = vld [vmem:[#allocation7 + $0xf0] sm:$0xff]  ;;  %v199_v63 = vld [vmem:[#allocation7 + $0x128] sm:$0xff]  ;;  %v201_v2 = vld [vmem:[#allocation7 + $0x138] sm:$0xff]  ;;  %v1277_v4 = vpack.c.bf16 %v190_v57, %v182_v56 }
  0x67   :  { %v207_v1 = vld [vmem:[#allocation7 + $0x168] sm:$0xff]  ;;  %v209_v3 = vld [vmem:[#allocation7 + $0x178] sm:$0xff]  ;;  %v1309_v5 = vpack.c.bf16 %v192_v62, %v184_v61  ;;  %v198_v6 = vld [vmem:[#allocation7 + $0x120] sm:$0xff] }
  0x68   :  { %1234 = vmatpush1.bf16.msra.mxu1 %v1233_v22  ;;  %v206_v7 = vld [vmem:[#allocation7 + $0x160] sm:$0xff]  ;;  %v1279_v8 = vpack.c.bf16 %v207_v1, %v199_v63  ;;  %v1311_v9 = vpack.c.bf16 %v209_v3, %v201_v2  ;;  %v200_v10 = vld [vmem:[#allocation7 + $0x130] sm:$0xff]  ;;  %v215_v12 = vld [vmem:[#allocation7 + $0x1a8] sm:$0xff] }
  0x69   :  { %1266 = vmatpush1.bf16.msra.mxu0 %v1265_v23  ;;  %1236 = vmatprep.subr.bf16.mxu1 %v1235_v27  ;;  %v208_v11 = vld [vmem:[#allocation7 + $0x170] sm:$0xff]  ;;  %v223_v13 = vld [vmem:[#allocation7 + $0x1e8] sm:$0xff]  ;;  %v217_v14 = vld [vmem:[#allocation7 + $0x1b8] sm:$0xff]  ;;  %v1281_v16 = vpack.c.bf16 %v206_v7, %v198_v6 }
  0x6a   :  { %1268 = vmatprep.subr.bf16.mxu0 %v1267_v31  ;;  %v225_v15 = vld [vmem:[#allocation7 + $0x1f8] sm:$0xff]  ;;  %v1313_v17 = vpack.c.bf16 %v208_v11, %v200_v10  ;;  %v214_v18 = vld [vmem:[#allocation7 + $0x1a0] sm:$0xff]  ;;  %v1283_v20 = vpack.c.bf16 %v223_v13, %v215_v12  ;;  %v216_v22 = vld [vmem:[#allocation7 + $0x1b0] sm:$0xff] }
  0x6b   :  { %v222_v19 = vld [vmem:[#allocation7 + $0x1e0] sm:$0xff]  ;;  %v1315_v21 = vpack.c.bf16 %v225_v15, %v217_v14  ;;  %v224_v23 = vld [vmem:[#allocation7 + $0x1f0] sm:$0xff]  ;;  %v231_v24 = vld [vmem:[#allocation7 + $0x228] sm:$0xff] }
  0x6c   :  { %1238 = vmatpush1.bf16.msra.mxu1 %v1237_v32  ;;  %v239_v25 = vld [vmem:[#allocation7 + $0x268] sm:$0xff]  ;;  %v233_v26 = vld [vmem:[#allocation7 + $0x238] sm:$0xff]  ;;  %v1285_v28 = vpack.c.bf16 %v222_v19, %v214_v18  ;;  %v230_v29 = vld [vmem:[#allocation7 + $0x220] sm:$0xff] }
  0x6d   :  { %1270 = vmatpush1.bf16.msra.mxu0 %v1269_v35  ;;  %1272 = vmatprep.subr.bf16.mxu1 %v1271_v39  ;;  %v241_v27 = vld [vmem:[#allocation7 + $0x278] sm:$0xff]  ;;  %v238_v30 = vld [vmem:[#allocation7 + $0x260] sm:$0xff]  ;;  %v1287_v31 = vpack.c.bf16 %v239_v25, %v231_v24  ;;  %v232_v33 = vld [vmem:[#allocation7 + $0x230] sm:$0xff] }
  0x6e   :  { %1304 = vmatprep.subr.bf16.mxu0 %v1303_v41  ;;  %v1319_v32 = vpack.c.bf16 %v241_v27, %v233_v26  ;;  %v240_v34 = vld [vmem:[#allocation7 + $0x270] sm:$0xff]  ;;  %v247_v35 = vld [vmem:[#allocation7 + $0x2a8] sm:$0xff]  ;;  %v249_v37 = vld [vmem:[#allocation7 + $0x2b8] sm:$0xff]  ;;  %v1289_v39 = vpack.c.bf16 %v238_v30, %v230_v29 }
  0x6f   :  { %v255_v36 = vld [vmem:[#allocation7 + $0x2e8] sm:$0xff]  ;;  %v257_v38 = vld [vmem:[#allocation7 + $0x2f8] sm:$0xff]  ;;  %v1321_v40 = vpack.c.bf16 %v240_v34, %v232_v33  ;;  %v246_v41 = vld [vmem:[#allocation7 + $0x2a0] sm:$0xff] }
  0x70   :  { %v1291_v43 = vpack.c.bf16 %v255_v36, %v247_v35  ;;  %v1323_v44 = vpack.c.bf16 %v257_v38, %v249_v37  ;;  %v248_v45 = vld [vmem:[#allocation7 + $0x2b0] sm:$0xff]  ;;  %v263_v47 = vld [vmem:[#allocation7 + $0x328] sm:$0xff]  ;;  %v265_v49 = vld [vmem:[#allocation7 + $0x338] sm:$0xff] }
  0x71   :  { %v256_v46 = vld [vmem:[#allocation7 + $0x2f0] sm:$0xff]  ;;  %v273_v50 = vld [vmem:[#allocation7 + $0x378] sm:$0xff]  ;;  %v287_v61 = vld [vmem:[#allocation7 + $0x3e8] sm:$0xff] }
  0x72   :  { %v1327_v56 = vpack.c.bf16 %v273_v50, %v265_v49  ;;  %v264_v57 = vld [vmem:[#allocation7 + $0x330] sm:$0xff]  ;;  %v281_v62 = vld [vmem:[#allocation7 + $0x3b8] sm:$0xff]  ;;  %v278_v3 = vld [vmem:[#allocation7 + $0x3a0] sm:$0xff] }
  0x73   :  { %v289_v63 = vld [vmem:[#allocation7 + $0x3f8] sm:$0xff]  ;;  %v280_v7 = vld [vmem:[#allocation7 + $0x3b0] sm:$0xff]  ;;  %v641_v10 = vld [vmem:[#allocation8 + $0x88] sm:$0xff] }
  0x74   :  { %v1331_v6 = vpack.c.bf16 %v289_v63, %v281_v62  ;;  %v672_v11 = vld [vmem:[#allocation8 + $0x180] sm:$0xff]  ;;  %v673_v12 = vld [vmem:[#allocation8 + $0x188] sm:$0xff]  ;;  %v675_v24 = vld [vmem:[#allocation8 + $0x198] sm:$0xff] }
  0x75   :  { %v624_v15 = vld [vmem:[#allocation8] sm:$0xff]  ;;  %v1367_v18 = vpack.c.bf16 %v673_v12, %v672_v11  ;;  %v626_v27 = vld [vmem:[#allocation8 + $0x10] sm:$0xff]  ;;  %v645_v33 = vld [vmem:[#allocation8 + $0xa8] sm:$0xff] }
  0x76   :  { %v656_v19 = vld [vmem:[#allocation8 + $0x100] sm:$0xff]  ;;  %v658_v30 = vld [vmem:[#allocation8 + $0x110] sm:$0xff]  ;;  %v677_v35 = vld [vmem:[#allocation8 + $0x1a8] sm:$0xff] }
  0x77   :  { %v676_v34 = vld [vmem:[#allocation8 + $0x1a0] sm:$0xff]  ;;  %v630_v49 = vld [vmem:[#allocation8 + $0x30] sm:$0xff]  ;;  %v631_v50 = vld [vmem:[#allocation8 + $0x38] sm:$0xff] }
  0x78   :  { %v628_v38 = vld [vmem:[#allocation8 + $0x20] sm:$0xff]  ;;  %v633_v63 = vld [vmem:[#allocation8 + $0x48] sm:$0xff]  ;;  %v634_v11 = vld [vmem:[#allocation8 + $0x50] sm:$0xff] }
  0x79   :  { %v632_v62 = vld [vmem:[#allocation8 + $0x40] sm:$0xff]  ;;  %v635_v12 = vld [vmem:[#allocation8 + $0x58] sm:$0xff] }
 0x120   :  { %v157_v48 = vpop.f32.mrb[0].mxu0 }
 0x121   :  { %v158_v52 = vadd.f32 %v1057_v42, %v157_v48  ;;  %v1206_v53 = vpop.f32.mrb[1].mxu0  ;;  %v254_v42 = vld [vmem:[#allocation7 + $0x2e0] sm:$0xff]  ;;  %v271_v48 = vld [vmem:[#allocation7 + $0x368] sm:$0xff] }
 0x122   :  { %v1293_v51 = vpack.c.bf16 %v254_v42, %v246_v41  ;;  %v262_v53 = vld [vmem:[#allocation7 + $0x320] sm:$0xff]  ;;  %v1375_v41 = vpack.c.bf16 %v677_v35, %v676_v34  ;;  %v687_v34 = vld [vmem:[#allocation8 + $0x1f8] sm:$0xff]  ;;  %v638_v35 = vld [vmem:[#allocation8 + $0x70] sm:$0xff] }
 0x123   :  { %v1698_v58 = vmax.f32 %v158_v52, 0.0  ;;  %v1325_v52 = vpack.c.bf16 %v256_v46, %v248_v45  ;;  %v660_v42 = vld [vmem:[#allocation8 + $0x120] sm:$0xff]  ;;  %v647_v45 = vld [vmem:[#allocation8 + $0xb8] sm:$0xff]  ;;  %v678_v46 = vld [vmem:[#allocation8 + $0x1b0] sm:$0xff] }
 0x125   :  { %397 = vmatmul.mubr.f32.vlgmr.msra.gmra.mrb[0].mxu1 %v1698_v58  ;;  %468 = vmatmul.mubr.f32.vlgmr.msra.gmra.mrb[2].mxu0 %v1698_v58 }
 0x126   :  { %1274 = vmatpush1.bf16.msra.mxu1 %v1273_v54  ;;  %1306 = vmatpush1.bf16.msra.mxu0 %v1305_v55  ;;  %v270_v54 = vld [vmem:[#allocation7 + $0x360] sm:$0xff]  ;;  %v1295_v55 = vpack.c.bf16 %v271_v48, %v263_v47  ;;  %v679_v47 = vld [vmem:[#allocation8 + $0x1b8] sm:$0xff] }
 0x127   :  { %1276 = vmatprep.subr.bf16.mxu1 %v1275_v59  ;;  %1308 = vmatprep.subr.bf16.mxu0 %v1307_v60  ;;  %v272_v59 = vld [vmem:[#allocation7 + $0x370] sm:$0xff]  ;;  %v279_v60 = vld [vmem:[#allocation7 + $0x3a8] sm:$0xff]  ;;  %v1297_v1 = vpack.c.bf16 %v270_v54, %v262_v53  ;;  %v663_v54 = vld [vmem:[#allocation8 + $0x138] sm:$0xff] }
 0x128   :  { %538 = vmatprep.mubr.f32.mxu1 %v1600_v0  ;;  %609 = vmatprep.mubr.f32.mxu0 %v1600_v0  ;;  %v1317_v0 = vpack.c.bf16 %v224_v23, %v216_v22  ;;  %v1329_v2 = vpack.c.bf16 %v272_v59, %v264_v57  ;;  %v643_v22 = vld [vmem:[#allocation8 + $0x98] sm:$0xff]  ;;  %v674_v23 = vld [vmem:[#allocation8 + $0x190] sm:$0xff]  ;;  %v680_v57 = vld [vmem:[#allocation8 + $0x1c0] sm:$0xff] }
 0x129   :  { %v1371_v29 = vpack.c.bf16 %v675_v24, %v674_v23  ;;  %v662_v53 = vld [vmem:[#allocation8 + $0x130] sm:$0xff]  ;;  %v681_v59 = vld [vmem:[#allocation8 + $0x1c8] sm:$0xff]  ;;  %v636_v23 = vld [vmem:[#allocation8 + $0x60] sm:$0xff] }
 0x12a   :  { %1278 = vmatpush1.bf16.msra.mxu1 %v1277_v4  ;;  %1310 = vmatpush1.bf16.msra.mxu0 %v1309_v5  ;;  %v286_v4 = vld [vmem:[#allocation7 + $0x3e0] sm:$0xff]  ;;  %v1299_v5 = vpack.c.bf16 %v287_v61, %v279_v60  ;;  %v1349_v60 = vpack.c.bf16 %v631_v50, %v630_v49  ;;  %v1381_v61 = vpack.c.bf16 %v663_v54, %v662_v53 }
 0x12b   :  { %1280 = vmatprep.subr.bf16.mxu1 %v1279_v8  ;;  %1312 = vmatprep.subr.bf16.mxu0 %v1311_v9  ;;  %v288_v8 = vld [vmem:[#allocation7 + $0x3f0] sm:$0xff]  ;;  %v640_v9 = vld [vmem:[#allocation8 + $0x80] sm:$0xff]  ;;  %v1301_v13 = vpack.c.bf16 %v286_v4, %v278_v3  ;;  %v665_v4 = vld [vmem:[#allocation8 + $0x148] sm:$0xff] }
 0x12c   :  { %v1333_v14 = vpack.c.bf16 %v288_v8, %v280_v7  ;;  %v664_v3 = vld [vmem:[#allocation8 + $0x140] sm:$0xff]  ;;  %v682_v7 = vld [vmem:[#allocation8 + $0x1d0] sm:$0xff]  ;;  %v683_v8 = vld [vmem:[#allocation8 + $0x1d8] sm:$0xff] }
 0x12e   :  { %1282 = vmatpush1.bf16.msra.mxu1 %v1281_v16  ;;  %1314 = vmatpush1.bf16.msra.mxu0 %v1313_v17  ;;  %v625_v16 = vld [vmem:[#allocation8 + $0x8] sm:$0xff]  ;;  %v1335_v17 = vpack.c.bf16 %v641_v10, %v640_v9  ;;  %v1353_v9 = vpack.c.bf16 %v633_v63, %v632_v62  ;;  %v1385_v10 = vpack.c.bf16 %v665_v4, %v664_v3  ;;  %v720_v4 = vld [vmem:[#allocation8 + $0x300] sm:$0xff] }
 0x12f   :  { %1284 = vmatprep.subr.bf16.mxu1 %v1283_v20  ;;  %1316 = vmatprep.subr.bf16.mxu0 %v1315_v21  ;;  %v657_v20 = vld [vmem:[#allocation8 + $0x108] sm:$0xff]  ;;  %v642_v21 = vld [vmem:[#allocation8 + $0x90] sm:$0xff]  ;;  %v1337_v25 = vpack.c.bf16 %v625_v16, %v624_v15  ;;  %v667_v16 = vld [vmem:[#allocation8 + $0x158] sm:$0xff] }
 0x130   :  { %v1369_v26 = vpack.c.bf16 %v657_v20, %v656_v19  ;;  %v666_v15 = vld [vmem:[#allocation8 + $0x150] sm:$0xff]  ;;  %v684_v19 = vld [vmem:[#allocation8 + $0x1e0] sm:$0xff]  ;;  %v685_v20 = vld [vmem:[#allocation8 + $0x1e8] sm:$0xff] }
 0x131   :  { %v689_v62 = vld [vmem:[#allocation8 + $0x208] sm:$0xff] }
 0x132   :  { %1286 = vmatpush1.bf16.msra.mxu1 %v1285_v28  ;;  %1318 = vmatpush1.bf16.msra.mxu0 %v1317_v0  ;;  %v627_v28 = vld [vmem:[#allocation8 + $0x18] sm:$0xff]  ;;  %v1339_v0 = vpack.c.bf16 %v643_v22, %v642_v21  ;;  %v1357_v21 = vpack.c.bf16 %v635_v12, %v634_v11  ;;  %v1389_v22 = vpack.c.bf16 %v667_v16, %v666_v15  ;;  %v690_v16 = vld [vmem:[#allocation8 + $0x210] sm:$0xff] }
 0x133   :  { %1288 = vmatprep.subr.bf16.mxu1 %v1287_v31  ;;  %1320 = vmatprep.subr.bf16.mxu0 %v1319_v32  ;;  %v659_v31 = vld [vmem:[#allocation8 + $0x118] sm:$0xff]  ;;  %v644_v32 = vld [vmem:[#allocation8 + $0xa0] sm:$0xff]  ;;  %v1341_v36 = vpack.c.bf16 %v627_v28, %v626_v27  ;;  %v669_v28 = vld [vmem:[#allocation8 + $0x168] sm:$0xff] }
 0x134   :  { %v1373_v37 = vpack.c.bf16 %v659_v31, %v658_v30  ;;  %v668_v27 = vld [vmem:[#allocation8 + $0x160] sm:$0xff]  ;;  %v654_v30 = vld [vmem:[#allocation8 + $0xf0] sm:$0xff]  ;;  %v655_v31 = vld [vmem:[#allocation8 + $0xf8] sm:$0xff] }
 0x135   :  { %v739_v11 = vld [vmem:[#allocation8 + $0x398] sm:$0xff] }
 0x136   :  { %1290 = vmatpush1.bf16.msra.mxu1 %v1289_v39  ;;  %1322 = vmatpush1.bf16.msra.mxu0 %v1321_v40  ;;  %v629_v39 = vld [vmem:[#allocation8 + $0x28] sm:$0xff]  ;;  %v1343_v40 = vpack.c.bf16 %v645_v33, %v644_v32  ;;  %v686_v32 = vld [vmem:[#allocation8 + $0x1f0] sm:$0xff]  ;;  %v1363_v33 = vpack.c.bf16 %v655_v31, %v654_v30 }
 0x137   :  { %1292 = vmatprep.subr.bf16.mxu1 %v1291_v43  ;;  %1324 = vmatprep.subr.bf16.mxu0 %v1323_v44  ;;  %v661_v43 = vld [vmem:[#allocation8 + $0x128] sm:$0xff]  ;;  %v646_v44 = vld [vmem:[#allocation8 + $0xb0] sm:$0xff]  ;;  %v1345_v48 = vpack.c.bf16 %v629_v39, %v628_v38 }
 0x138   :  { %v670_v39 = vld [vmem:[#allocation8 + $0x170] sm:$0xff]  ;;  %v693_v30 = vld [vmem:[#allocation8 + $0x228] sm:$0xff] }
 0x13a   :  { %1294 = vmatpush1.bf16.msra.mxu1 %v1293_v51  ;;  %1326 = vmatpush1.bf16.msra.mxu0 %v1325_v52  ;;  %v1347_v51 = vpack.c.bf16 %v647_v45, %v646_v44  ;;  %v1379_v52 = vpack.c.bf16 %v679_v47, %v678_v46  ;;  %v736_v44 = vld [vmem:[#allocation8 + $0x380] sm:$0xff]  ;;  %v737_v46 = vld [vmem:[#allocation8 + $0x388] sm:$0xff] }
 0x13b   :  { %1296 = vmatprep.subr.bf16.mxu1 %v1295_v55  ;;  %1328 = vmatprep.subr.bf16.mxu0 %v1327_v56  ;;  %v648_v55 = vld [vmem:[#allocation8 + $0xc0] sm:$0xff]  ;;  %v649_v56 = vld [vmem:[#allocation8 + $0xc8] sm:$0xff]  ;;  %v1431_v47 = vpack.c.bf16 %v737_v46, %v736_v44  ;;  %v727_v46 = vld [vmem:[#allocation8 + $0x338] sm:$0xff] }
 0x13e   :  { %1298 = vmatpush1.bf16.msra.mxu1 %v1297_v1  ;;  %1330 = vmatpush1.bf16.msra.mxu0 %v1329_v2  ;;  %v1351_v1 = vpack.c.bf16 %v649_v56, %v648_v55  ;;  %v1383_v2 = vpack.c.bf16 %v681_v59, %v680_v57 }
 0x13f   :  { %1300 = vmatprep.subr.bf16.mxu1 %v1299_v5  ;;  %1332 = vmatprep.subr.bf16.mxu0 %v1331_v6  ;;  %v650_v5 = vld [vmem:[#allocation8 + $0xd0] sm:$0xff]  ;;  %v651_v6 = vld [vmem:[#allocation8 + $0xd8] sm:$0xff] }
 0x142   :  { %1302 = vmatpush1.bf16.msra.mxu1 %v1301_v13  ;;  %1334 = vmatpush1.bf16.msra.mxu0 %v1333_v14  ;;  %v1355_v13 = vpack.c.bf16 %v651_v6, %v650_v5  ;;  %v1387_v14 = vpack.c.bf16 %v683_v8, %v682_v7  ;;  %v721_v5 = vld [vmem:[#allocation8 + $0x308] sm:$0xff]  ;;  %v706_v6 = vld [vmem:[#allocation8 + $0x290] sm:$0xff] }
 0x143   :  { %1336 = vmatprep.subr.bf16.mxu1 %v1335_v17  ;;  %1368 = vmatprep.subr.bf16.mxu0 %v1367_v18  ;;  %v652_v17 = vld [vmem:[#allocation8 + $0xe0] sm:$0xff]  ;;  %v653_v18 = vld [vmem:[#allocation8 + $0xe8] sm:$0xff]  ;;  %v1433_v15 = vpack.c.bf16 %v721_v5, %v720_v4  ;;  %v698_v4 = vld [vmem:[#allocation8 + $0x250] sm:$0xff] }
 0x144   :  { %v1359_v24 = vpack.c.bf16 %v653_v18, %v652_v17  ;;  %v691_v17 = vld [vmem:[#allocation8 + $0x218] sm:$0xff] }
 0x145   :  { %539 = vmatmul.mubr.f32.vlgmr.msra.gmra.mrb[2].mxu1 %v1698_v58  ;;  %610 = vmatmul.mubr.f32.vlgmr.msra.gmra.mrb[4].mxu0 %v1698_v58  ;;  %v1377_v58 = vpack.c.bf16 %v661_v43, %v660_v42  ;;  %v704_v42 = vld [vmem:[#allocation8 + $0x280] sm:$0xff]  ;;  %v705_v43 = vld [vmem:[#allocation8 + $0x288] sm:$0xff]  ;;  %v699_v5 = vld [vmem:[#allocation8 + $0x258] sm:$0xff] }
 0x146   :  { %1338 = vmatpush3.bf16.msra.mxu1 %v1337_v25  ;;  %1370 = vmatpush3.bf16.msra.mxu0 %v1369_v26  ;;  %v1391_v25 = vpack.c.bf16 %v685_v20, %v684_v19  ;;  %v637_v26 = vld [vmem:[#allocation8 + $0x68] sm:$0xff]  ;;  %v1399_v45 = vpack.c.bf16 %v705_v43, %v704_v42  ;;  %v695_v42 = vld [vmem:[#allocation8 + $0x238] sm:$0xff] }
 0x147   :  { %1340 = vmatprep.subr.bf16.mxu1 %v1339_v0  ;;  %1372 = vmatprep.subr.bf16.mxu0 %v1371_v29  ;;  %v1361_v0 = vpack.c.bf16 %v637_v26, %v636_v23  ;;  %v1393_v29 = vpack.c.bf16 %v669_v28, %v668_v27  ;;  %v723_v23 = vld [vmem:[#allocation8 + $0x318] sm:$0xff]  ;;  %v740_v26 = vld [vmem:[#allocation8 + $0x3a0] sm:$0xff]  ;;  %v741_v27 = vld [vmem:[#allocation8 + $0x3a8] sm:$0xff]  ;;  %v1405_v28 = vpack.c.bf16 %v691_v17, %v690_v16 }
 0x148   :  { %v700_v17 = vld [vmem:[#allocation8 + $0x260] sm:$0xff] }
 0x14a   :  { %1342 = vmatpush3.bf16.msra.mxu1 %v1341_v36  ;;  %1374 = vmatpush3.bf16.msra.mxu0 %v1373_v37  ;;  %v639_v36 = vld [vmem:[#allocation8 + $0x78] sm:$0xff]  ;;  %v1395_v37 = vpack.c.bf16 %v687_v34, %v686_v32  ;;  %v1439_v32 = vpack.c.bf16 %v741_v27, %v740_v26  ;;  %v725_v34 = vld [vmem:[#allocation8 + $0x328] sm:$0xff] }
 0x14b   :  { %1344 = vmatprep.subr.bf16.mxu1 %v1343_v40  ;;  %1376 = vmatprep.subr.bf16.mxu0 %v1375_v41  ;;  %v1365_v38 = vpack.c.bf16 %v639_v36, %v638_v35  ;;  %v671_v40 = vld [vmem:[#allocation8 + $0x178] sm:$0xff]  ;;  %v710_v35 = vld [vmem:[#allocation8 + $0x2b0] sm:$0xff] }
 0x14c   :  { %v1397_v41 = vpack.c.bf16 %v671_v40, %v670_v39  ;;  %v711_v36 = vld [vmem:[#allocation8 + $0x2b8] sm:$0xff] }
 0x14d   :  { %v1411_v43 = vpack.c.bf16 %v711_v36, %v710_v35  ;;  %v719_v27 = vld [vmem:[#allocation8 + $0x2f8] sm:$0xff] }
 0x14e   :  { %1346 = vmatpush3.bf16.msra.mxu1 %v1345_v48  ;;  %1378 = vmatpush3.bf16.msra.mxu0 %v1377_v58  ;;  %v292_v48 = vlaneseq  ;;  %v703_v36 = vld [vmem:[#allocation8 + $0x278] sm:$0xff] }
 0x14f   :  { %1348 = vmatprep.subr.bf16.mxu1 %v1347_v51  ;;  %1380 = vmatprep.subr.bf16.mxu0 %v1379_v52  ;;  %v1713_v51 = vld [vmem:[%s1748_s4] sm:$0xff] }
 0x150   :  { %v1706_v58 = vshrl.u32 %v292_v48, 7  ;;  %v713_v48 = vld [vmem:[#allocation8 + $0x2c8] sm:$0xff] }
 0x152   :  { %1350 = vmatpush3.bf16.msra.mxu1 %v1349_v60  ;;  %1382 = vmatpush3.bf16.msra.mxu0 %v1381_v61  ;;  %v294_v49 = vsub.s32 0, %v1706_v58  ;;  %v302_v50 = vsub.s32 2, %v1706_v58  ;;  %v298_v52 = vsub.s32 1, %v1706_v58  ;;  %v306_v53 = vsub.s32 3, %v1706_v58  ;;  %v688_v61 = vld [vmem:[#allocation8 + $0x200] sm:$0xff] }
 0x153   :  { %1352 = vmatprep.subr.bf16.mxu1 %v1351_v1  ;;  %1384 = vmatprep.subr.bf16.mxu0 %v1383_v2  ;;  %v310_v16 = vsub.s32 4, %v1706_v58  ;;  %v322_v26 = vsub.s32 7, %v1706_v58 }
 0x154   :  { %v295_v54 = vrot.slane %v1713_v51, %v294_v49  ;;  %v303_v55 = vrot.slane %v1713_v51, %v302_v50  ;;  %v299_v56 = vrot.slane %v1713_v51, %v298_v52  ;;  %v307_v57 = vrot.slane %v1713_v51, %v306_v53  ;;  %v744_v49 = vld [vmem:[#allocation8 + $0x3c0] sm:$0xff]  ;;  %v745_v50 = vld [vmem:[#allocation8 + $0x3c8] sm:$0xff] }
 0x156   :  { %1354 = vmatpush3.bf16.msra.mxu1 %v1353_v9  ;;  %1386 = vmatpush3.bf16.msra.mxu0 %v1385_v10  ;;  %v707_v9 = vld [vmem:[#allocation8 + $0x298] sm:$0xff]  ;;  %v738_v10 = vld [vmem:[#allocation8 + $0x390] sm:$0xff] }
 0x157   :  { %1356 = vmatprep.subr.bf16.mxu1 %v1355_v13  ;;  %1388 = vmatprep.subr.bf16.mxu0 %v1387_v14  ;;  %v1401_v14 = vpack.c.bf16 %v689_v62, %v688_v61  ;;  %v1403_v20 = vpack.c.bf16 %v707_v9, %v706_v6  ;;  %v714_v61 = vld [vmem:[#allocation8 + $0x2d0] sm:$0xff]  ;;  %v715_v62 = vld [vmem:[#allocation8 + $0x2d8] sm:$0xff] }
 0x158   :  { %v1419_v6 = vpack.c.bf16 %v715_v62, %v714_v61  ;;  %v731_v9 = vld [vmem:[#allocation8 + $0x358] sm:$0xff] }
 0x15a   :  { %1358 = vmatpush3.bf16.msra.mxu1 %v1357_v21  ;;  %1390 = vmatpush3.bf16.msra.mxu0 %v1389_v22  ;;  %v1435_v21 = vpack.c.bf16 %v739_v11, %v738_v10  ;;  %v722_v22 = vld [vmem:[#allocation8 + $0x310] sm:$0xff]  ;;  %v716_v10 = vld [vmem:[#allocation8 + $0x2e0] sm:$0xff]  ;;  %v717_v11 = vld [vmem:[#allocation8 + $0x2e8] sm:$0xff] }
 0x15b   :  { %1360 = vmatprep.subr.bf16.mxu1 %v1359_v24  ;;  %1392 = vmatprep.subr.bf16.mxu0 %v1391_v25  ;;  %v708_v24 = vld [vmem:[#allocation8 + $0x2a0] sm:$0xff]  ;;  %v709_v25 = vld [vmem:[#allocation8 + $0x2a8] sm:$0xff] }
 0x15c   :  { %v1407_v31 = vpack.c.bf16 %v709_v25, %v708_v24  ;;  %v718_v24 = vld [vmem:[#allocation8 + $0x2f0] sm:$0xff]  ;;  %v314_v25 = vsub.s32 5, %v1706_v58 }
 0x15e   :  { %1362 = vmatpush3.bf16.msra.mxu1 %v1361_v0  ;;  %1394 = vmatpush3.bf16.msra.mxu0 %v1393_v29  ;;  %v1437_v0 = vpack.c.bf16 %v723_v23, %v722_v22  ;;  %v692_v29 = vld [vmem:[#allocation8 + $0x220] sm:$0xff]  ;;  %v733_v23 = vld [vmem:[#allocation8 + $0x368] sm:$0xff] }
 0x15f   :  { %1364 = vmatprep.subr.bf16.mxu1 %v1363_v33  ;;  %1396 = vmatprep.subr.bf16.mxu0 %v1395_v37  ;;  %v724_v33 = vld [vmem:[#allocation8 + $0x320] sm:$0xff]  ;;  %v742_v37 = vld [vmem:[#allocation8 + $0x3b0] sm:$0xff]  ;;  %v1409_v39 = vpack.c.bf16 %v693_v30, %v692_v29  ;;  %v311_v29 = vrot.slane %v1713_v51, %v310_v16 }
 0x160   :  { %v1441_v40 = vpack.c.bf16 %v725_v34, %v724_v33  ;;  %v732_v22 = vld [vmem:[#allocation8 + $0x360] sm:$0xff]  ;;  %v1427_v34 = vpack.c.bf16 %v719_v27, %v718_v24 }
 0x162   :  { %1366 = vmatpush3.bf16.msra.mxu1 %v1365_v38  ;;  %1398 = vmatpush3.bf16.msra.mxu0 %v1397_v41  ;;  %v743_v38 = vld [vmem:[#allocation8 + $0x3b8] sm:$0xff]  ;;  %v694_v41 = vld [vmem:[#allocation8 + $0x230] sm:$0xff] }
 0x163   :  { %1400 = vmatprep.subr.bf16.mxu1 %v1399_v45  ;;  %1432 = vmatprep.subr.bf16.mxu0 %v1431_v47  ;;  %v1443_v44 = vpack.c.bf16 %v743_v38, %v742_v37  ;;  %v726_v45 = vld [vmem:[#allocation8 + $0x330] sm:$0xff]  ;;  %v712_v47 = vld [vmem:[#allocation8 + $0x2c0] sm:$0xff]  ;;  %v1413_v52 = vpack.c.bf16 %v695_v42, %v694_v41  ;;  %v735_v38 = vld [vmem:[#allocation8 + $0x378] sm:$0xff] }
 0x164   :  { %v1445_v53 = vpack.c.bf16 %v727_v46, %v726_v45  ;;  %v734_v37 = vld [vmem:[#allocation8 + $0x370] sm:$0xff] }
 0x1f8   :  { %v398_v59 = vpop.f32.mrb[0].mxu1  ;;  %v469_v60 = vpop.f32.mrb[2].mxu0 }
 0x1f9   :  { %v399_v63 = vadd.f32 %v398_v59, %v295_v54  ;;  %v470_v1 = vadd.f32 %v469_v60, %v303_v55  ;;  %v400_v2 = vpop.f32.mrb[1].mxu1  ;;  %v471_v3 = vpop.f32.mrb[3].mxu0  ;;  %v696_v54 = vld [vmem:[#allocation8 + $0x240] sm:$0xff]  ;;  %v697_v55 = vld [vmem:[#allocation8 + $0x248] sm:$0xff] }
 0x1fa   :  { %v401_v7 = vadd.f32 %v400_v2, %v299_v56  ;;  %v472_v8 = vadd.f32 %v471_v3, %v307_v57  ;;  %v1415_v56 = vpack.c.bf16 %v713_v48, %v712_v47  ;;  %v1447_v57 = vpack.c.bf16 %v745_v50, %v744_v49  ;;  %v728_v59 = vld [vmem:[#allocation8 + $0x340] sm:$0xff]  ;;  %v729_v60 = vld [vmem:[#allocation8 + $0x348] sm:$0xff] }
 0x1fb   :  { %v616_v18 = vmax.f32 %v399_v63, 0.0  ;;  %v618_v19 = vmax.f32 %v470_v1, 0.0  ;;  %v746_v63 = vld [vmem:[#allocation8 + $0x3d0] sm:$0xff]  ;;  %v747_v1 = vld [vmem:[#allocation8 + $0x3d8] sm:$0xff]  ;;  %v1417_v2 = vpack.c.bf16 %v697_v55, %v696_v54  ;;  %v1449_v3 = vpack.c.bf16 %v729_v60, %v728_v59 }
 0x1fc   :  { %v617_v12 = vmax.f32 %v401_v7, 0.0  ;;  %v619_v13 = vmax.f32 %v472_v8, 0.0  ;;  %v1451_v7 = vpack.c.bf16 %v747_v1, %v746_v63  ;;  %v730_v8 = vld [vmem:[#allocation8 + $0x350] sm:$0xff] }
 0x1fe   :  { %823 = vmatprep.mubr.f32.mxu1 %v617_v12  ;;  %893 = vmatprep.mubr.f32.mxu0 %v619_v13  ;;  %v748_v12 = vld [vmem:[#allocation8 + $0x3e0] sm:$0xff]  ;;  %v749_v13 = vld [vmem:[#allocation8 + $0x3e8] sm:$0xff] }
 0x1ff   :  { %824 = vmatmul.mubr.f32.vlgmr.msra.gmra.mrb[4].mxu1 %v616_v18  ;;  %894 = vmatmul.mubr.f32.vlgmr.msra.gmra.mrb[6].mxu0 %v618_v19  ;;  %v701_v18 = vld [vmem:[#allocation8 + $0x268] sm:$0xff]  ;;  %v1423_v19 = vpack.c.bf16 %v717_v11, %v716_v10 }
 0x200   :  { %1402 = vmatpush3.bf16.msra.mxu1 %v1401_v14  ;;  %1434 = vmatpush3.bf16.msra.mxu0 %v1433_v15  ;;  %v1421_v14 = vpack.c.bf16 %v699_v5, %v698_v4  ;;  %v1453_v15 = vpack.c.bf16 %v731_v9, %v730_v8  ;;  %v1425_v30 = vpack.c.bf16 %v701_v18, %v700_v17 }
 0x201   :  { %1404 = vmatprep.subr.bf16.mxu1 %v1403_v20  ;;  %1436 = vmatprep.subr.bf16.mxu0 %v1435_v21  ;;  %v1455_v20 = vpack.c.bf16 %v749_v13, %v748_v12  ;;  %v318_v21 = vsub.s32 6, %v1706_v58  ;;  %v315_v58 = vrot.slane %v1713_v51, %v314_v25 }
 0x203   :  { %v319_v33 = vrot.slane %v1713_v51, %v318_v21 }
 0x204   :  { %1406 = vmatpush3.bf16.msra.mxu1 %v1405_v28  ;;  %1438 = vmatpush3.bf16.msra.mxu0 %v1437_v0  ;;  %v750_v28 = vld [vmem:[#allocation8 + $0x3f0] sm:$0xff]  ;;  %v751_v0 = vld [vmem:[#allocation8 + $0x3f8] sm:$0xff] }
 0x205   :  { %1408 = vmatprep.subr.bf16.mxu1 %v1407_v31  ;;  %1440 = vmatprep.subr.bf16.mxu0 %v1439_v32  ;;  %v1457_v31 = vpack.c.bf16 %v733_v23, %v732_v22  ;;  %v702_v32 = vld [vmem:[#allocation8 + $0x270] sm:$0xff]  ;;  %v1459_v35 = vpack.c.bf16 %v751_v0, %v750_v28 }
 0x206   :  { %v1429_v42 = vpack.c.bf16 %v703_v36, %v702_v32 }
 0x208   :  { %1410 = vmatpush3.bf16.msra.mxu1 %v1409_v39  ;;  %1442 = vmatpush3.bf16.msra.mxu0 %v1441_v40  ;;  %v323_v39 = vrot.slane %v1713_v51, %v322_v26 }
 0x209   :  { %1412 = vmatprep.subr.bf16.mxu1 %v1411_v43  ;;  %1444 = vmatprep.subr.bf16.mxu0 %v1443_v44  ;;  %v1461_v43 = vpack.c.bf16 %v735_v38, %v734_v37 }
 0x20c   :  { %1414 = vmatpush3.bf16.msra.mxu1 %v1413_v52  ;;  %1446 = vmatpush3.bf16.msra.mxu0 %v1445_v53 }
 0x20d   :  { %1416 = vmatprep.subr.bf16.mxu1 %v1415_v56  ;;  %1448 = vmatprep.subr.bf16.mxu0 %v1447_v57  ;;  %v1059_v56 = vld [vmem:[%s1750_s6] ss:$0 sm:$0xff] }
 0x210   :  { %1418 = vmatpush3.bf16.msra.mxu1 %v1417_v2  ;;  %1450 = vmatpush3.bf16.msra.mxu0 %v1449_v3 }
 0x211   :  { %1420 = vmatprep.subr.bf16.mxu1 %v1419_v6  ;;  %1452 = vmatprep.subr.bf16.mxu0 %v1451_v7 }
 0x214   :  { %1422 = vmatpush3.bf16.msra.mxu1 %v1421_v14  ;;  %1454 = vmatpush3.bf16.msra.mxu0 %v1453_v15 }
 0x215   :  { %1424 = vmatprep.subr.bf16.mxu1 %v1423_v19  ;;  %1456 = vmatprep.subr.bf16.mxu0 %v1455_v20 }
 0x218   :  { %v540_v40 = vpop.f32.mrb[2].mxu1  ;;  %v611_v41 = vpop.f32.mrb[4].mxu0  ;;  %1426 = vmatpush3.bf16.msra.mxu1 %v1425_v30  ;;  %1458 = vmatpush3.bf16.msra.mxu0 %v1457_v31 }
 0x219   :  { %v541_v44 = vadd.f32 %v540_v40, %v311_v29  ;;  %v612_v45 = vadd.f32 %v611_v41, %v319_v33  ;;  %v542_v46 = vpop.f32.mrb[3].mxu1  ;;  %v613_v47 = vpop.f32.mrb[5].mxu0  ;;  %1428 = vmatprep.subr.bf16.mxu1 %v1427_v34  ;;  %1460 = vmatprep.subr.bf16.mxu0 %v1459_v35 }
 0x21a   :  { %v543_v48 = vadd.f32 %v542_v46, %v315_v58  ;;  %v614_v49 = vadd.f32 %v613_v47, %v323_v39 }
 0x21b   :  { %v620_v53 = vmax.f32 %v541_v44, 0.0  ;;  %v622_v51 = vmax.f32 %v612_v45, 0.0 }
 0x21c   :  { %v621_v50 = vmax.f32 %v543_v48, 0.0  ;;  %v623_v52 = vmax.f32 %v614_v49, 0.0  ;;  %1430 = vmatpush3.bf16.msra.mxu1 %v1429_v42  ;;  %1462 = vmatpush3.bf16.msra.mxu0 %v1461_v43 }
 0x21e   :  { %963 = vmatprep.mubr.f32.mxu1 %v621_v50  ;;  %1033 = vmatprep.mubr.f32.mxu0 %v623_v52 }
 0x21f   :  { %964 = vmatmul.mubr.f32.vlgmr.msra.gmra.mrb[6].mxu1 %v620_v53  ;;  %1034 = vmatmul.mubr.f32.vlgmr.msra.gmra.mrb[8].mxu0 %v622_v51 }
 0x2d2   :  { %v1094_v54 = vpop.f32.mrb[4].mxu1  ;;  %v1129_v55 = vpop.f32.mrb[6].mxu0 }
 0x2d3   :  { %v1095_v57 = vpop.f32.mrb[5].mxu1  ;;  %v1130_v59 = vpop.f32.mrb[7].mxu0 }
 0x2d4   :  { %v1096_v60 = vadd.f32 %v1095_v57, %v1094_v54  ;;  %v1131_v61 = vadd.f32 %v1130_v59, %v1129_v55 }
 0x2d6   :  { %v826_v62 = vadd.f32 %v1096_v60, %v1059_v56 }
 0x2d8   :  { %v896_v63 = vadd.f32 %v1131_v61, %v826_v62 }
 0x2f2   :  { %v1164_v1 = vpop.f32.mrb[6].mxu1  ;;  %v1199_v2 = vpop.f32.mrb[8].mxu0 }
 0x2f3   :  { %v1165_v3 = vpop.f32.mrb[7].mxu1  ;;  %v1200_v4 = vpop.f32.mrb[9].mxu0 }
 0x2f4   :  { %v1166_v5 = vadd.f32 %v1165_v3, %v1164_v1  ;;  %v1201_v6 = vadd.f32 %v1200_v4, %v1199_v2 }
 0x2f6   :  { %v966_v7 = vadd.f32 %v1166_v5, %v896_v63 }
 0x2f8   :  { %v1036_v8 = vadd.f32 %v1201_v6, %v966_v7 }
 0x2fa   :  { %1039 = vst [vmem:[#allocation10] sm:$0xff] %v1036_v8 }
 0x2fb   :  { %1573 = shalt.err (!%p1570_p8)
}
 0x2fc   :  { %s1574_s11 = scalar_lea.hbm %s1751_s7, 128 }
 0x2fd   :  { %p1575_p9 = scmp.ne.s32.totalorder %s1751_s7, %s1574_s11  ;;  %p1578_p10 = scmp.lt.u32.totalorder %s1574_s11, %s1751_s7 }
 0x2ff   :  { %p1580_p11 = pnand %p1578_p10, %p1575_p9 }
 0x301   :  { %1583 = shalt.err (!%p1580_p11)
}
 0x302   :  { %1049 = dma.vmem_to_hbm [thread:$0]  %s1047_s8, 128, %s1751_s7, [#allocation4]  }
 0x303   :  { %1590 = dma.done.wait [#allocation4], 128  }
 0x304   :  { %1591 = vsyncadd [#allocation4], 4294967168 }
 0x305   :  { %1053 = vsyncpa [#allocation3], 1 }
 0x306   :  { %1054 = vsyncpa [#allocation6], 1 }
 0x307   :  { %1055 = vsyncpa [#allocation9], 1 }
 0x308   :  { %1056 = vsyncpa [#allocation4], 1 }

</bundles_post_ra>
